<compile_context>
chip_gen: v7x
topology: tpu7x:2x2x1
jax: 0.10.0
libtpu: 0.0.40
codegen_flags: <defaults>
</compile_context>

<pallas_src>
import jax
import jax.numpy as jnp
from jax.experimental import pallas as pl
from jax.experimental.pallas import tpu as pltpu


def brain_kernel(x_ref, w1_ref, b1_ref, w2_ref, b2_ref, o_ref):
    # Linear(nStateDim, 128) + ReLU
    h = jnp.dot(x_ref[...], w1_ref[...], preferred_element_type=jnp.float32)
    h = jnp.maximum(h + b1_ref[...], 0.0)          # (TB,128) + (1,128) broadcast
    # Linear(128, nActions)
    out = jnp.dot(h, w2_ref[...], preferred_element_type=jnp.float32)
    o_ref[...] = (out + b2_ref[...]).astype(o_ref.dtype)


def _round_up(n, m):
    return ((n + m - 1) // m) * m


@jax.jit
def brain_forward(x, w1, b1, w2, b2):
    # Mirror the PyTorch `if x.ndimension() == 1: x = x.unsqueeze(0)` behavior.
    if x.ndim == 1:
        x = x[None, :]
    x = x.astype(jnp.float32)
    # Accept either PyTorch-style 1-D biases or (1, F) biases.
    b1 = b1.reshape(1, -1).astype(jnp.float32)
    b2 = b2.reshape(1, -1).astype(jnp.float32)
    w1 = w1.astype(jnp.float32)
    w2 = w2.astype(jnp.float32)

    B, D = x.shape
    H = w1.shape[1]
    A = w2.shape[1]

    # --- Batch tiling (only dim that gets padded) ---------------------------
    B8 = _round_up(B, 8)
    TB_CAP = 1024
    # >= 2 tiles when B >= 16 so v7x's 2 TensorCores can both run; otherwise
    # just enough tiles to keep each tile under TB_CAP rows.
    n_tiles = max(pl.cdiv(B8, TB_CAP), 2 if B8 >= 16 else 1)
    TB = _round_up(pl.cdiv(B8, n_tiles), 8)        # tile rows, multiple of 8
    B_pad = _round_up(B8, TB)                      # minimal overshoot (< TB)
    n_tiles = B_pad // TB

    x_p = x if B_pad == B else jnp.pad(x, ((0, B_pad - B), (0, 0)))

    # Advisory cost hint from TRUE dims (not padded).
    flops = 2 * B_pad * (D * H + H * A)
    bytes_accessed = 4 * (B_pad * D + D * H + H + H * A + A + B_pad * A)

    out = pl.pallas_call(
        brain_kernel,
        out_shape=jax.ShapeDtypeStruct((B_pad, A), jnp.float32),
        grid=(n_tiles,),
        in_specs=[
            # Batch-tiled activations, feature dim at full (unpadded) extent.
            pl.BlockSpec((TB, D), lambda i: (i, 0)),
            # Weights / biases: constant index_map -> DMAed once, VMEM-resident.
            pl.BlockSpec((D, H), lambda i: (0, 0)),
            pl.BlockSpec((1, H), lambda i: (0, 0)),
            pl.BlockSpec((H, A), lambda i: (0, 0)),
            pl.BlockSpec((1, A), lambda i: (0, 0)),
        ],
        out_specs=pl.BlockSpec((TB, A), lambda i: (i, 0)),
        compiler_params=pltpu.CompilerParams(
            # Batch tiles are independent -> shard across v7x's 2 TensorCores.
            dimension_semantics=("parallel",),
        ),
        cost_estimate=pl.CostEstimate(
            flops=flops, bytes_accessed=bytes_accessed, transcendentals=0
        ),
    )(x_p, w1, b1, w2, b2)

    # Strip batch padding (no feature/action padding to strip).
    return out if B_pad == B else out[:B]


def init_params(key, n_state_dim, n_actions, hidden=128):
    # Deterministic init mimicking PyTorch nn.Linear default
    # (uniform in [-1/sqrt(fan_in), 1/sqrt(fan_in)]).
    k1, k2, k3, k4 = jax.random.split(key, 4)
    bound1 = 1.0 / jnp.sqrt(jnp.float32(n_state_dim))
    bound2 = 1.0 / jnp.sqrt(jnp.float32(hidden))
    w1 = jax.random.uniform(k1, (n_state_dim, hidden), jnp.float32, -bound1, bound1)
    b1 = jax.random.uniform(k2, (hidden,), jnp.float32, -bound1, bound1)
    w2 = jax.random.uniform(k3, (hidden, n_actions), jnp.float32, -bound2, bound2)
    b2 = jax.random.uniform(k4, (n_actions,), jnp.float32, -bound2, bound2)
    return w1, b1, w2, b2


if __name__ == "__main__":
    key = jax.random.PRNGKey(0)
    kp, kx, kx2 = jax.random.split(key, 3)

    n_state_dim = 32   # nStateDim
    n_actions = 8      # nActions
    batch = 4

    w1, b1, w2, b2 = init_params(kp, n_state_dim, n_actions)

    # Small batch (single tile).
    x = jax.random.normal(kx, (batch, n_state_dim), jnp.float32)
    out = brain_forward(x, w1, b1, w2, b2)
    jax.block_until_ready(out)
    ref = jnp.maximum(x @ w1 + b1[None, :], 0.0) @ w2 + b2[None, :]
    assert out.shape == (batch, n_actions)
    assert jnp.allclose(out, ref, atol=1e-4, rtol=1e-4)

    # 1-D input path (x.unsqueeze(0) behavior).
    out1 = brain_forward(x[0], w1, b1, w2, b2)
    jax.block_until_ready(out1)
    assert out1.shape == (1, n_actions)
    assert jnp.allclose(out1, ref[0:1], atol=1e-4, rtol=1e-4)

    # Larger batch exercising the multi-tile (2-tile) path with batch padding.
    x2 = jax.random.normal(kx2, (40, n_state_dim), jnp.float32)
    out2 = brain_forward(x2, w1, b1, w2, b2)
    jax.block_until_ready(out2)
    ref2 = jnp.maximum(x2 @ w1 + b1[None, :], 0.0) @ w2 + b2[None, :]
    assert out2.shape == (40, n_actions)
    assert jnp.allclose(out2, ref2, atol=1e-4, rtol=1e-4)

    print("KERNEL_OK")
</pallas_src>

<mosaic_0001>
module attributes {stable_mosaic.version = 11 : i64} {
  func.func @brain_kernel(%arg0: i32, %arg1: memref<8x32xf32, #tpu.memory_space<vmem>>, %arg2: memref<32x128xf32, #tpu.memory_space<vmem>>, %arg3: memref<1x128xf32, #tpu.memory_space<vmem>>, %arg4: memref<128x8xf32, #tpu.memory_space<vmem>>, %arg5: memref<1x8xf32, #tpu.memory_space<vmem>>, %arg6: memref<8x8xf32, #tpu.memory_space<vmem>>) attributes {dimension_semantics = [#tpu.dimension_semantics<parallel>], iteration_bounds = array<i64: 1>, scalar_prefetch = 0 : i64, scratch_operands = 0 : i64, tpu.core_type = #tpu.core_type<tc>, window_params = [{transform_indices = @transform_0, window_bounds = array<i64: 8, 32>}, {pipeline_mode = #tpu.pipeline_mode<synchronous>, transform_indices = @transform_1, window_bounds = array<i64: 32, 128>}, {pipeline_mode = #tpu.pipeline_mode<synchronous>, transform_indices = @transform_2, window_bounds = array<i64: 1, 128>}, {pipeline_mode = #tpu.pipeline_mode<synchronous>, transform_indices = @transform_3, window_bounds = array<i64: 128, 8>}, {pipeline_mode = #tpu.pipeline_mode<synchronous>, transform_indices = @transform_4, window_bounds = array<i64: 1, 8>}, {transform_indices = @transform_5, window_bounds = array<i64: 8, 8>}]} {
    %c0 = arith.constant 0 : index
    %c0_0 = arith.constant 0 : index
    %0 = vector.load %arg1[%c0, %c0_0] : memref<8x32xf32, #tpu.memory_space<vmem>>, vector<8x32xf32>
    %c0_1 = arith.constant 0 : index
    %c0_2 = arith.constant 0 : index
    %1 = vector.load %arg2[%c0_1, %c0_2] : memref<32x128xf32, #tpu.memory_space<vmem>>, vector<32x128xf32>
    %cst = arith.constant dense<0.000000e+00> : vector<8x128xf32>
    %2 = tpu.matmul %0, %1, %cst {dimension_numbers = #tpu.dot_dimension_numbers<[1], [0], [0], [1], [0, 0, 1, 1], [], []>} : vector<8x32xf32>, vector<32x128xf32>, vector<8x128xf32> -> vector<8x128xf32>
    %c0_3 = arith.constant 0 : index
    %c0_4 = arith.constant 0 : index
    %3 = vector.load %arg3[%c0_3, %c0_4] : memref<1x128xf32, #tpu.memory_space<vmem>>, vector<1x128xf32>
    %4 = vector.broadcast %3 : vector<1x128xf32> to vector<8x128xf32>
    %5 = arith.addf %2, %4 : vector<8x128xf32>
    %cst_5 = arith.constant 0.000000e+00 : f32
    %6 = vector.broadcast %cst_5 : f32 to vector<8x128xf32>
    %7 = arith.maximumf %5, %6 : vector<8x128xf32>
    %c0_6 = arith.constant 0 : index
    %c0_7 = arith.constant 0 : index
    %8 = vector.load %arg4[%c0_6, %c0_7] : memref<128x8xf32, #tpu.memory_space<vmem>>, vector<128x8xf32>
    %cst_8 = arith.constant dense<0.000000e+00> : vector<8x8xf32>
    %9 = tpu.matmul %7, %8, %cst_8 {dimension_numbers = #tpu.dot_dimension_numbers<[1], [0], [0], [1], [0, 0, 1, 1], [], []>} : vector<8x128xf32>, vector<128x8xf32>, vector<8x8xf32> -> vector<8x8xf32>
    %c0_9 = arith.constant 0 : index
    %c0_10 = arith.constant 0 : index
    %10 = vector.load %arg5[%c0_9, %c0_10] : memref<1x8xf32, #tpu.memory_space<vmem>>, vector<1x8xf32>
    %11 = vector.broadcast %10 : vector<1x8xf32> to vector<8x8xf32>
    %12 = arith.addf %9, %11 : vector<8x8xf32>
    %c0_11 = arith.constant 0 : index
    %c0_12 = arith.constant 0 : index
    %13 = vector.load %arg6[%c0_11, %c0_12] : memref<8x8xf32, #tpu.memory_space<vmem>>, vector<8x8xf32>
    tpu.vector_store %arg6[%c0_11, %c0_12], %12 {strides = array<i32>} : memref<8x8xf32, #tpu.memory_space<vmem>>, vector<8x8xf32>,
    return
  }
  func.func @transform_0(%arg0: i32) -> (i32, i32) {
    %c0_i32 = arith.constant 0 : i32
    %c0_i32_0 = arith.constant 0 : i32
    return %arg0, %c0_i32 : i32, i32
  }
  func.func @transform_1(%arg0: i32) -> (i32, i32) {
    %c0_i32 = arith.constant 0 : i32
    %c0_i32_0 = arith.constant 0 : i32
    %c0_i32_1 = arith.constant 0 : i32
    return %c0_i32, %c0_i32_0 : i32, i32
  }
  func.func @transform_2(%arg0: i32) -> (i32, i32) {
    %c0_i32 = arith.constant 0 : i32
    %c0_i32_0 = arith.constant 0 : i32
    %c0_i32_1 = arith.constant 0 : i32
    return %c0_i32, %c0_i32_0 : i32, i32
  }
  func.func @transform_3(%arg0: i32) -> (i32, i32) {
    %c0_i32 = arith.constant 0 : i32
    %c0_i32_0 = arith.constant 0 : i32
    %c0_i32_1 = arith.constant 0 : i32
    return %c0_i32, %c0_i32_0 : i32, i32
  }
  func.func @transform_4(%arg0: i32) -> (i32, i32) {
    %c0_i32 = arith.constant 0 : i32
    %c0_i32_0 = arith.constant 0 : i32
    %c0_i32_1 = arith.constant 0 : i32
    return %c0_i32, %c0_i32_0 : i32, i32
  }
  func.func @transform_5(%arg0: i32) -> (i32, i32) {
    %c0_i32 = arith.constant 0 : i32
    %c0_i32_0 = arith.constant 0 : i32
    return %arg0, %c0_i32 : i32, i32
  }
}

</mosaic_0001>

<bundles_post_ra>
// kernel: brain_forward.1
= control target key start
LH: loop header
LB: loop body
LE: loop exit
PB: predicated region body
PF: predicated region fallthrough
CT: control target
= control target key end

     0   :  { %v310_v0 = vmov 0.0|0.0   ;;  %vm311_vm0 = vmmov 0   ;;  %v312_v4 = vmov 0.0   ;;  %vm32_vm1 = vcmask 261120   ;;  %s415_s1 = inlined_call_operand.vmem [shape: f32[32,128], index: 1, kind: input, shape index: {}]   ;;  %s416_s3 = inlined_call_operand.vmem [shape: f32[128,8], index: 3, kind: input, shape index: {}]   ;;  %s417_s0 = inlined_call_operand.vmem [shape: f32[8,32], index: 0, kind: input, shape index: {}]   ;;  %s418_s2 = inlined_call_operand.vmem [shape: f32[1,128], index: 2, kind: input, shape index: {}]   ;;  %s419_s4 = inlined_call_operand.vmem [shape: f32[1,8], index: 4, kind: input, shape index: {}]   ;;  %s420_s5 = inlined_call_operand.vmem [shape: f32[8,8], index: 5, kind: output, shape index: {}]  }
   0x1   :  { %277 = vmatprep.subr.bf16.mxu0 %v310_v0  ;;  %v21_v1 = vld [vmem:[%s415_s1] sm:$0xff]  ;;  %v22_v2 = vld [vmem:[%s415_s1 + $0x8] sm:$0xff]  ;;  %v23_v3 = vld [vmem:[%s415_s1 + $0x10] sm:$0xff]  ;;  %239 = vmatprep.mubr.msk.f32.mxu0 %vm311_vm0, %v312_v4  ;;  %vm200_vm2 = vcmask 64512  }
   0x2   :  { %v278_v5 = vpack.c.bf16 %v22_v2, %v21_v1  ;;  %v24_v6 = vld [vmem:[%s415_s1 + $0x18] sm:$0xff]  ;;  %283 = vmatprep.subr.bf16.mxu1 %v310_v0  ;;  %v107_v7 = vld [vmem:[%s416_s3] sm:$0xff]  ;;  %274 = vmatprep.mubr.msk.f32.mxu1 %vm311_vm0, %v312_v4  ;;  %v108_v8 = vld [vmem:[%s416_s3 + $0x8] sm:$0xff] }
   0x3   :  { %v109_v9 = vld [vmem:[%s416_s3 + $0x10] sm:$0xff]  ;;  %v110_v10 = vld [vmem:[%s416_s3 + $0x18] sm:$0xff]  ;;  %v281_v11 = vpack.c.bf16 %v24_v6, %v23_v3  ;;  %v284_v12 = vpack.c.bf16 %v108_v8, %v107_v7  ;;  %v111_v14 = vld [vmem:[%s416_s3 + $0x20] sm:$0xff] }
   0x4   :  { %279 = vmatpush3.bf16.msra.mxu0 %v278_v5  ;;  %v287_v13 = vpack.c.bf16 %v110_v10, %v109_v9  ;;  %v112_v15 = vld [vmem:[%s416_s3 + $0x28] sm:$0xff]  ;;  %v20_v16 = vld [vmem:[%s417_s0] sm:$0xff]  ;;  %v113_v18 = vld [vmem:[%s416_s3 + $0x30] sm:$0xff] }
   0x5   :  { %280 = vmatprep.subr.bf16.mxu0 %v310_v0  ;;  %285 = vmatpush3.bf16.msra.mxu1 %v284_v12  ;;  %v290_v17 = vpack.c.bf16 %v112_v15, %v111_v14  ;;  %v114_v19 = vld [vmem:[%s416_s3 + $0x38] sm:$0xff]  ;;  %v115_v21 = vld [vmem:[%s416_s3 + $0x40] sm:$0xff]  ;;  %v116_v22 = vld [vmem:[%s416_s3 + $0x48] sm:$0xff] }
   0x6   :  { %286 = vmatprep.subr.bf16.mxu1 %v310_v0  ;;  %v293_v20 = vpack.c.bf16 %v114_v19, %v113_v18  ;;  %v296_v23 = vpack.c.bf16 %v116_v22, %v115_v21  ;;  %v117_v24 = vld [vmem:[%s416_s3 + $0x50] sm:$0xff]  ;;  %v118_v25 = vld [vmem:[%s416_s3 + $0x58] sm:$0xff]  ;;  %v119_v27 = vld [vmem:[%s416_s3 + $0x60] sm:$0xff] }
   0x7   :  { %v299_v26 = vpack.c.bf16 %v118_v25, %v117_v24  ;;  %v120_v28 = vld [vmem:[%s416_s3 + $0x68] sm:$0xff]  ;;  %v121_v30 = vld [vmem:[%s416_s3 + $0x70] sm:$0xff]  ;;  %v122_v31 = vld [vmem:[%s416_s3 + $0x78] sm:$0xff] }
   0x8   :  { %282 = vmatpush3.bf16.msra.mxu0 %v281_v11  ;;  %v302_v29 = vpack.c.bf16 %v120_v28, %v119_v27  ;;  %v305_v32 = vpack.c.bf16 %v122_v31, %v121_v30  ;;  %v206_v33 = vld [vmem:[%s418_s2] ss:$0 sm:$0xff] }
   0x9   :  { %288 = vmatpush3.bf16.msra.mxu1 %v287_v13  ;;  %v208_v38 = vld [vmem:[%s419_s4] ss:$0 sm:$0xff] }
   0xa   :  { %289 = vmatprep.subr.bf16.mxu1 %v310_v0 }
   0xb   :  { %240 = vmatmul.mubr.msk.f32.vlgmr.msra.gmra.mrb[0].mxu0 %vm32_vm1, %v20_v16 }
   0xd   :  { %291 = vmatpush3.bf16.msra.mxu1 %v290_v17 }
   0xe   :  { %292 = vmatprep.subr.bf16.mxu1 %v310_v0 }
  0x11   :  { %294 = vmatpush3.bf16.msra.mxu1 %v293_v20 }
  0x12   :  { %295 = vmatprep.subr.bf16.mxu1 %v310_v0 }
  0x15   :  { %297 = vmatpush3.bf16.msra.mxu1 %v296_v23 }
  0x16   :  { %298 = vmatprep.subr.bf16.mxu1 %v310_v0 }
  0x19   :  { %300 = vmatpush3.bf16.msra.mxu1 %v299_v26 }
  0x1a   :  { %301 = vmatprep.subr.bf16.mxu1 %v310_v0 }
  0x1d   :  { %303 = vmatpush3.bf16.msra.mxu1 %v302_v29 }
  0x1e   :  { %304 = vmatprep.subr.bf16.mxu1 %v310_v0 }
  0x21   :  { %306 = vmatpush3.bf16.msra.mxu1 %v305_v32 }
  0xde   :  { %v102_v34 = vpop.f32.mrb[0].mxu0 }
  0xdf   :  { %v103_v35 = vadd.f32 %v206_v33, %v102_v34  ;;  %v241_v36 = vpop.f32.mrb[1].mxu0 }
  0xe1   :  { %v106_v37 = vmax.f32 %v103_v35, 0.0 }
  0xe3   :  { %275 = vmatmul.mubr.f32.vlgmr.msra.gmra.mrb[0].mxu1 %v106_v37 }
 0x1b6   :  { %v196_v39 = vpop.f32.mrb[0].mxu1 }
 0x1b7   :  { %v197_v40 = vadd.f32 %v208_v38, %v196_v39  ;;  %v276_v41 = vpop.f32.mrb[1].mxu1 }
 0x1b9   :  { %201 = vst.msk [vmem:[%s420_s5] sm:$0xff] %vm200_vm2, %v197_v40 }

</bundles_post_ra>
